<compile_context>
chip_gen: v7x
topology: tpu7x:2x2x1
jax: 0.10.0
libtpu: 0.0.40
codegen_flags: <defaults>
</compile_context>

<pallas_src>
import jax
import jax.numpy as jnp
from jax.experimental import pallas as pl
from jax.experimental.pallas import tpu as pltpu

BN_EPS = 1e-5
_LANES = 128

# Row offsets of the zero-padded blocks inside the single packed slab.
_W1_ROWS = (0, 8)        # (3, 128)   real, rows 3..7 zero
_W2_ROWS = (8, 136)      # (128, 128) cols 64..127 zero
_W3_ROWS = (136, 264)    # (128, 128) rows 64..127 and cols 32..127 zero
_W4_ROWS = (264, 392)    # (128, 128) rows 32..127 and cols 1..127 zero
_VEC_ROWS = (392, 400)   # (8, 128):  g1, be1, g2, be2, g3, be3, b4, 0
_SLAB_ROWS = 400


def length_estimator_kernel(x_ref, w_ref, o_ref):
    x = x_ref[...]                      # (B, 8) f32, cols 3..7 zero
    inv_b = 1.0 / x.shape[0]            # static

    v = w_ref[_VEC_ROWS[0]:_VEC_ROWS[1], :]     # (8, 128)
    g1, be1 = v[0:1, :], v[1:2, :]
    g2, be2 = v[2:3, :], v[3:4, :]
    g3, be3 = v[4:5, :], v[5:6, :]
    b4 = v[6:7, :]

    def bn_relu(h, g, b):
        # Two-pass batch stats (training-mode, biased variance); the centered
        # values are reused for the affine, padded lanes (g=b=0) stay exactly 0.
        mean = jnp.sum(h, axis=0, keepdims=True) * inv_b
        c = h - mean
        var = jnp.sum(c * c, axis=0, keepdims=True) * inv_b
        scale = g * jax.lax.rsqrt(var + BN_EPS)
        return jnp.maximum(c * scale + b, 0.0)

    # Linear(3,128) [+BN+ReLU]; aligned (B,8)x(8,128) — linear bias cancelled by BN.
    h = jnp.dot(x, w_ref[_W1_ROWS[0]:_W1_ROWS[1], :],
                preferred_element_type=jnp.float32)
    h = bn_relu(h, g1, be1)

    # Linear(128,64) padded to 128 lanes [+BN+ReLU]; padded lanes stay 0.
    h = jnp.dot(h, w_ref[_W2_ROWS[0]:_W2_ROWS[1], :],
                preferred_element_type=jnp.float32)
    h = bn_relu(h, g2, be2)

    # Linear(64,32) padded to 128 lanes [+BN+ReLU]
    h = jnp.dot(h, w_ref[_W3_ROWS[0]:_W3_ROWS[1], :],
                preferred_element_type=jnp.float32)
    h = bn_relu(h, g3, be3)

    # Linear(32,1) padded to 128 lanes + Softplus (beta=1, threshold=20)
    z = jnp.dot(h, w_ref[_W4_ROWS[0]:_W4_ROWS[1], :],
                preferred_element_type=jnp.float32) + b4
    sp = jnp.log1p(jnp.exp(jnp.minimum(z, 20.0)))
    out = jnp.where(z > 20.0, z, sp)
    # TODO(synk): lane-dense output slab for large B (masked vst is fine at B=64).
    o_ref[...] = out[:, 0:1]            # only lane 0 is the real output


def pack_params(params):
    """Pack all module parameters into ONE (400, 128) f32 VMEM slab.

    Rows   0:8   -> W1 (3,128) zero-padded to 8 rows
    Rows   8:136 -> W2 (128,64) zero-padded to 128 lanes
    Rows 136:264 -> W3 (64,32)  zero-padded
    Rows 264:392 -> W4 (32,1)   zero-padded
    Rows 392:400 -> [g1, be1, g2, be2, g3, be3, b4, 0] each zero-padded to 128.
    Biases b1/b2/b3 are intentionally dropped (cancelled by training-mode BN).
    """
    (w1, _b1, g1, be1,
     w2, _b2, g2, be2,
     w3, _b3, g3, be3,
     w4, b4) = params

    def pad_to(a, rows, cols):
        return jnp.pad(a, ((0, rows - a.shape[0]), (0, cols - a.shape[1])))

    def row(vec):
        vec = vec.reshape(1, -1)
        return jnp.pad(vec, ((0, 0), (0, _LANES - vec.shape[-1])))

    slab = jnp.concatenate([
        pad_to(w1, 8, _LANES),      # rows   0:8
        pad_to(w2, 128, _LANES),    # rows   8:136
        pad_to(w3, 128, _LANES),    # rows 136:264
        pad_to(w4, 128, _LANES),    # rows 264:392
        row(g1), row(be1), row(g2), row(be2), row(g3), row(be3), row(b4),
        jnp.zeros((1, _LANES), jnp.float32),
    ], axis=0).astype(jnp.float32)
    assert slab.shape == (_SLAB_ROWS, _LANES)
    return slab


def length_estimator_forward(x, slab):
    B = x.shape[0]
    # Aligned first matmul: pad x to 8 lanes (W1 slab rows 3..7 are already 0).
    x_pad = jnp.pad(x.astype(jnp.float32), ((0, 0), (0, 8 - x.shape[1])))

    # Cost hint reflecting the padded MXU work actually performed.
    flops = 2 * B * (8 * 128 + 3 * 128 * 128)
    transcendentals = 2 * B * 128 + 3 * 128   # softplus exp+log1p on (B,128) + BN rsqrt
    bytes_accessed = 4 * (x_pad.size + slab.size + B)
    cost = pl.CostEstimate(flops=flops, transcendentals=transcendentals,
                           bytes_accessed=bytes_accessed)

    vmem_spec = pl.BlockSpec(memory_space=pltpu.MemorySpace.VMEM)
    return pl.pallas_call(
        length_estimator_kernel,
        out_shape=jax.ShapeDtypeStruct((B, 1), jnp.float32),
        in_specs=[vmem_spec, vmem_spec],
        out_specs=vmem_spec,
        compiler_params=pltpu.CompilerParams(
            vmem_limit_bytes=4 * 1024 * 1024,   # actual footprint ~0.3 MiB
        ),
        cost_estimate=cost,
    )(x_pad, slab)


def init_params(key):
    """Deterministic synthetic init matching the PyTorch module's parameter set.
    Linear weights stored as (in, out); biases / BN gamma / beta as (1, out)."""
    dims = [(3, 128), (128, 64), (64, 32), (32, 1)]
    params = []
    for i, (fi, fo) in enumerate(dims):
        kw, kb, kg, kbe = jax.random.split(jax.random.fold_in(key, i), 4)
        bound = 1.0 / jnp.sqrt(fi)
        w = jax.random.uniform(kw, (fi, fo), jnp.float32, -bound, bound)
        b = jax.random.uniform(kb, (1, fo), jnp.float32, -bound, bound)
        params.append(w)
        params.append(b)
        if i < 3:  # BatchNorm follows the first three Linear layers
            gamma = 1.0 + 0.1 * jax.random.normal(kg, (1, fo), jnp.float32)
            beta = 0.1 * jax.random.normal(kbe, (1, fo), jnp.float32)
            params.append(gamma)
            params.append(beta)
    return tuple(params)


def reference_forward(x, params):
    """Pure-JAX reference matching PyTorch training-mode forward (keeps b1-b3)."""
    (w1, b1, g1, be1,
     w2, b2, g2, be2,
     w3, b3, g3, be3,
     w4, b4) = params

    def bn_relu(h, g, b):
        m = h.mean(0, keepdims=True)
        v = ((h - m) ** 2).mean(0, keepdims=True)
        return jnp.maximum((h - m) / jnp.sqrt(v + BN_EPS) * g + b, 0.0)

    h = bn_relu(x @ w1 + b1, g1, be1)
    h = bn_relu(h @ w2 + b2, g2, be2)
    h = bn_relu(h @ w3 + b3, g3, be3)
    z = h @ w4 + b4
    return jnp.where(z > 20.0, z, jnp.log1p(jnp.exp(jnp.minimum(z, 20.0))))


if __name__ == "__main__":
    key = jax.random.PRNGKey(0)
    kx, kp = jax.random.split(key)

    B = 64
    x = jax.random.normal(kx, (B, 3), jnp.float32)
    params = init_params(kp)
    slab = pack_params(params)        # pack once; kernel takes 2 inputs total

    out = jax.block_until_ready(length_estimator_forward(x, slab))
    ref = reference_forward(x, params)

    assert out.shape == (B, 1), out.shape
    assert jnp.allclose(out, ref, atol=1e-4, rtol=1e-4), float(
        jnp.max(jnp.abs(out - ref))
    )
    print("KERNEL_OK")
</pallas_src>

<mosaic_0001>
module attributes {stable_mosaic.version = 11 : i64} {
  func.func @length_estimator_kernel(%arg0: memref<64x8xf32, #tpu.memory_space<vmem>>, %arg1: memref<400x128xf32, #tpu.memory_space<vmem>>, %arg2: memref<64x1xf32, #tpu.memory_space<vmem>>) attributes {dimension_semantics = [], scalar_prefetch = 0 : i64, scratch_operands = 0 : i64, tpu.core_type = #tpu.core_type<tc>} {
    %c0 = arith.constant 0 : index
    %c0_0 = arith.constant 0 : index
    %0 = vector.load %arg0[%c0, %c0_0] : memref<64x8xf32, #tpu.memory_space<vmem>>, vector<64x8xf32>
    %c392 = arith.constant 392 : index
    %c0_1 = arith.constant 0 : index
    %1 = vector.load %arg1[%c392, %c0_1] : memref<400x128xf32, #tpu.memory_space<vmem>>, vector<8x128xf32>
    %2 = vector.extract_strided_slice %1 {offsets = [0, 0], sizes = [1, 128], strides = [1, 1]} : vector<8x128xf32> to vector<1x128xf32>
    %3 = vector.extract_strided_slice %1 {offsets = [1, 0], sizes = [1, 128], strides = [1, 1]} : vector<8x128xf32> to vector<1x128xf32>
    %4 = vector.extract_strided_slice %1 {offsets = [2, 0], sizes = [1, 128], strides = [1, 1]} : vector<8x128xf32> to vector<1x128xf32>
    %5 = vector.extract_strided_slice %1 {offsets = [3, 0], sizes = [1, 128], strides = [1, 1]} : vector<8x128xf32> to vector<1x128xf32>
    %6 = vector.extract_strided_slice %1 {offsets = [4, 0], sizes = [1, 128], strides = [1, 1]} : vector<8x128xf32> to vector<1x128xf32>
    %7 = vector.extract_strided_slice %1 {offsets = [5, 0], sizes = [1, 128], strides = [1, 1]} : vector<8x128xf32> to vector<1x128xf32>
    %8 = vector.extract_strided_slice %1 {offsets = [6, 0], sizes = [1, 128], strides = [1, 1]} : vector<8x128xf32> to vector<1x128xf32>
    %c0_2 = arith.constant 0 : index
    %c0_3 = arith.constant 0 : index
    %9 = vector.load %arg1[%c0_2, %c0_3] : memref<400x128xf32, #tpu.memory_space<vmem>>, vector<8x128xf32>
    %cst = arith.constant dense<0.000000e+00> : vector<64x128xf32>
    %10 = tpu.matmul %0, %9, %cst {dimension_numbers = #tpu.dot_dimension_numbers<[1], [0], [0], [1], [0, 0, 1, 1], [], []>} : vector<64x8xf32>, vector<8x128xf32>, vector<64x128xf32> -> vector<64x128xf32>
    %cst_4 = arith.constant dense<0.000000e+00> : vector<128xf32>
    %11 = vector.multi_reduction <add>, %10, %cst_4 [0] : vector<64x128xf32> to vector<128xf32>
    %12 = vector.shape_cast %11 : vector<128xf32> to vector<1x128xf32>
    %cst_5 = arith.constant 1.562500e-02 : f32
    %13 = vector.broadcast %cst_5 : f32 to vector<1x128xf32>
    %14 = arith.mulf %12, %13 : vector<1x128xf32>
    %15 = vector.broadcast %14 : vector<1x128xf32> to vector<64x128xf32>
    %16 = arith.subf %10, %15 : vector<64x128xf32>
    %17 = arith.mulf %16, %16 : vector<64x128xf32>
    %cst_6 = arith.constant dense<0.000000e+00> : vector<128xf32>
    %18 = vector.multi_reduction <add>, %17, %cst_6 [0] : vector<64x128xf32> to vector<128xf32>
    %19 = vector.shape_cast %18 : vector<128xf32> to vector<1x128xf32>
    %cst_7 = arith.constant 1.562500e-02 : f32
    %20 = vector.broadcast %cst_7 : f32 to vector<1x128xf32>
    %21 = arith.mulf %19, %20 : vector<1x128xf32>
    %cst_8 = arith.constant 9.99999974E-6 : f32
    %22 = vector.broadcast %cst_8 : f32 to vector<1x128xf32>
    %23 = arith.addf %21, %22 : vector<1x128xf32>
    %24 = math.rsqrt %23 : vector<1x128xf32>
    %25 = arith.mulf %2, %24 : vector<1x128xf32>
    %26 = vector.broadcast %25 : vector<1x128xf32> to vector<64x128xf32>
    %27 = arith.mulf %16, %26 : vector<64x128xf32>
    %28 = vector.broadcast %3 : vector<1x128xf32> to vector<64x128xf32>
    %29 = arith.addf %27, %28 : vector<64x128xf32>
    %cst_9 = arith.constant 0.000000e+00 : f32
    %30 = vector.broadcast %cst_9 : f32 to vector<64x128xf32>
    %31 = arith.maximumf %29, %30 : vector<64x128xf32>
    %c8 = arith.constant 8 : index
    %c0_10 = arith.constant 0 : index
    %32 = vector.load %arg1[%c8, %c0_10] : memref<400x128xf32, #tpu.memory_space<vmem>>, vector<128x128xf32>
    %cst_11 = arith.constant dense<0.000000e+00> : vector<64x128xf32>
    %33 = tpu.matmul %31, %32, %cst_11 {dimension_numbers = #tpu.dot_dimension_numbers<[1], [0], [0], [1], [0, 0, 1, 1], [], []>} : vector<64x128xf32>, vector<128x128xf32>, vector<64x128xf32> -> vector<64x128xf32>
    %cst_12 = arith.constant dense<0.000000e+00> : vector<128xf32>
    %34 = vector.multi_reduction <add>, %33, %cst_12 [0] : vector<64x128xf32> to vector<128xf32>
    %35 = vector.shape_cast %34 : vector<128xf32> to vector<1x128xf32>
    %cst_13 = arith.constant 1.562500e-02 : f32
    %36 = vector.broadcast %cst_13 : f32 to vector<1x128xf32>
    %37 = arith.mulf %35, %36 : vector<1x128xf32>
    %38 = vector.broadcast %37 : vector<1x128xf32> to vector<64x128xf32>
    %39 = arith.subf %33, %38 : vector<64x128xf32>
    %40 = arith.mulf %39, %39 : vector<64x128xf32>
    %cst_14 = arith.constant dense<0.000000e+00> : vector<128xf32>
    %41 = vector.multi_reduction <add>, %40, %cst_14 [0] : vector<64x128xf32> to vector<128xf32>
    %42 = vector.shape_cast %41 : vector<128xf32> to vector<1x128xf32>
    %cst_15 = arith.constant 1.562500e-02 : f32
    %43 = vector.broadcast %cst_15 : f32 to vector<1x128xf32>
    %44 = arith.mulf %42, %43 : vector<1x128xf32>
    %cst_16 = arith.constant 9.99999974E-6 : f32
    %45 = vector.broadcast %cst_16 : f32 to vector<1x128xf32>
    %46 = arith.addf %44, %45 : vector<1x128xf32>
    %47 = math.rsqrt %46 : vector<1x128xf32>
    %48 = arith.mulf %4, %47 : vector<1x128xf32>
    %49 = vector.broadcast %48 : vector<1x128xf32> to vector<64x128xf32>
    %50 = arith.mulf %39, %49 : vector<64x128xf32>
    %51 = vector.broadcast %5 : vector<1x128xf32> to vector<64x128xf32>
    %52 = arith.addf %50, %51 : vector<64x128xf32>
    %cst_17 = arith.constant 0.000000e+00 : f32
    %53 = vector.broadcast %cst_17 : f32 to vector<64x128xf32>
    %54 = arith.maximumf %52, %53 : vector<64x128xf32>
    %c136 = arith.constant 136 : index
    %c0_18 = arith.constant 0 : index
    %55 = vector.load %arg1[%c136, %c0_18] : memref<400x128xf32, #tpu.memory_space<vmem>>, vector<128x128xf32>
    %cst_19 = arith.constant dense<0.000000e+00> : vector<64x128xf32>
    %56 = tpu.matmul %54, %55, %cst_19 {dimension_numbers = #tpu.dot_dimension_numbers<[1], [0], [0], [1], [0, 0, 1, 1], [], []>} : vector<64x128xf32>, vector<128x128xf32>, vector<64x128xf32> -> vector<64x128xf32>
    %cst_20 = arith.constant dense<0.000000e+00> : vector<128xf32>
    %57 = vector.multi_reduction <add>, %56, %cst_20 [0] : vector<64x128xf32> to vector<128xf32>
    %58 = vector.shape_cast %57 : vector<128xf32> to vector<1x128xf32>
    %cst_21 = arith.constant 1.562500e-02 : f32
    %59 = vector.broadcast %cst_21 : f32 to vector<1x128xf32>
    %60 = arith.mulf %58, %59 : vector<1x128xf32>
    %61 = vector.broadcast %60 : vector<1x128xf32> to vector<64x128xf32>
    %62 = arith.subf %56, %61 : vector<64x128xf32>
    %63 = arith.mulf %62, %62 : vector<64x128xf32>
    %cst_22 = arith.constant dense<0.000000e+00> : vector<128xf32>
    %64 = vector.multi_reduction <add>, %63, %cst_22 [0] : vector<64x128xf32> to vector<128xf32>
    %65 = vector.shape_cast %64 : vector<128xf32> to vector<1x128xf32>
    %cst_23 = arith.constant 1.562500e-02 : f32
    %66 = vector.broadcast %cst_23 : f32 to vector<1x128xf32>
    %67 = arith.mulf %65, %66 : vector<1x128xf32>
    %cst_24 = arith.constant 9.99999974E-6 : f32
    %68 = vector.broadcast %cst_24 : f32 to vector<1x128xf32>
    %69 = arith.addf %67, %68 : vector<1x128xf32>
    %70 = math.rsqrt %69 : vector<1x128xf32>
    %71 = arith.mulf %6, %70 : vector<1x128xf32>
    %72 = vector.broadcast %71 : vector<1x128xf32> to vector<64x128xf32>
    %73 = arith.mulf %62, %72 : vector<64x128xf32>
    %74 = vector.broadcast %7 : vector<1x128xf32> to vector<64x128xf32>
    %75 = arith.addf %73, %74 : vector<64x128xf32>
    %cst_25 = arith.constant 0.000000e+00 : f32
    %76 = vector.broadcast %cst_25 : f32 to vector<64x128xf32>
    %77 = arith.maximumf %75, %76 : vector<64x128xf32>
    %c264 = arith.constant 264 : index
    %c0_26 = arith.constant 0 : index
    %78 = vector.load %arg1[%c264, %c0_26] : memref<400x128xf32, #tpu.memory_space<vmem>>, vector<128x128xf32>
    %cst_27 = arith.constant dense<0.000000e+00> : vector<64x128xf32>
    %79 = tpu.matmul %77, %78, %cst_27 {dimension_numbers = #tpu.dot_dimension_numbers<[1], [0], [0], [1], [0, 0, 1, 1], [], []>} : vector<64x128xf32>, vector<128x128xf32>, vector<64x128xf32> -> vector<64x128xf32>
    %80 = vector.broadcast %8 : vector<1x128xf32> to vector<64x128xf32>
    %81 = arith.addf %79, %80 : vector<64x128xf32>
    %cst_28 = arith.constant 2.000000e+01 : f32
    %82 = vector.broadcast %cst_28 : f32 to vector<64x128xf32>
    %83 = arith.minimumf %81, %82 : vector<64x128xf32>
    %84 = math.exp %83 : vector<64x128xf32>
    %85 = math.log1p %84 : vector<64x128xf32>
    %cst_29 = arith.constant 2.000000e+01 : f32
    %86 = vector.broadcast %cst_29 : f32 to vector<64x128xf32>
    %87 = arith.cmpf ogt, %81, %86 : vector<64x128xf32>
    %88 = arith.select %87, %81, %85 : vector<64x128xi1>, vector<64x128xf32>
    %89 = vector.extract_strided_slice %88 {offsets = [0, 0], sizes = [64, 1], strides = [1, 1]} : vector<64x128xf32> to vector<64x1xf32>
    %c0_30 = arith.constant 0 : index
    %c0_31 = arith.constant 0 : index
    %90 = vector.load %arg2[%c0_30, %c0_31] : memref<64x1xf32, #tpu.memory_space<vmem>>, vector<64x1xf32>
    tpu.vector_store %arg2[%c0_30, %c0_31], %89 {strides = array<i32>} : memref<64x1xf32, #tpu.memory_space<vmem>>, vector<64x1xf32>,
    return
  }
}

</mosaic_0001>

<bundles_post_ra>
// kernel: tpu_custom_call.1
= control target key start
LH: loop header
LB: loop body
LE: loop exit
PB: predicated region body
PF: predicated region fallthrough
CT: control target
= control target key end

     0   :  { %7 = vsyncpa [#allocation3], 0  ;;  %s1307_s9 = smov [#allocation2]   ;;  %s1515_s0 = inlined_call_operand.vmem [shape: f32[64,8], index: 0, kind: input, shape index: {}]   ;;  %s1516_s1 = inlined_call_operand.hbm [shape: f32[400,128], index: 1, kind: input, shape index: {}]   ;;  %s1517_s2 = inlined_call_operand.vmem [shape: f32[64,1], index: 2, kind: output, shape index: {}]  }
   0x1   :  { %s15_s10 = sshll.u32 %s1307_s9, 4  ;;  %s1283_s13 = scalar_lea.hbm %s1516_s1, 6400  ;;  %s16_s10 = int_to_ptr.vmem [resolvable:$true] %s15_s10 }
   0x2   :  { %p1284_p0 = scmp.ne.s32.totalorder %s1516_s1, %s1283_s13  ;;  %p1287_p1 = scmp.lt.u32.totalorder %s1283_s13, %s1516_s1 }
   0x4   :  { %p1289_p2 = pnand %p1287_p1, %p1284_p0 }
   0x6   :  { %1292 = shalt.err (!%p1289_p2)
}
   0x7   :  { %s1293_s18 = scalar_lea.vmem %s16_s10, 6400  ;;  %p1298_p4 = scmp.lt.s32.totalorder %s16_s10, %s16_s10 }
   0x8   :  { %p1294_p3 = scmp.ne.s32.totalorder %s16_s10, %s1293_s18  ;;  %p1299_p5 = scmp.lt.s32.totalorder %s1293_s18, %s1293_s18 }
   0xa   :  { %p1300_p6 = por %p1299_p5, %p1298_p4 }
   0xc   :  { %p1301_p7 = pnand %p1300_p6, %p1294_p3 }
   0xe   :  { %1304 = shalt.err (!%p1301_p7)
}
   0xf   :  { %s1308_s19 = smov 128   ;;  %s1309_s20 = smov 8  }
  0x10   :  { %21 = dma.hbm_to_vmem [thread:$0]  %s1516_s1, 6400, %s16_s10, [#allocation3], %s1308_s19, %s1308_s19, %s1309_s20  }
  0x11   :  { %1305 = dma.done.wait [#allocation3], 6400  }
  0x12   :  { %1306 = vsyncadd [#allocation3], 4294960896  ;;  %vm35_vm0 = vcmask 64512   ;;  %v34_v0 = vld [vmem:[#allocation2] sm:$0xff]  ;;  %v26_v2 = vld [vmem:[%s1515_s0 + $0x8] sm:$0xff]  ;;  %vm881_vm2 = vcmask 7168  }
  0x13   :  { %v25_v1 = vld [vmem:[%s1515_s0] sm:$0xff]  ;;  %984 = vmatprep.subr.mxu0 %v34_v0  ;;  %v27_v3 = vld [vmem:[%s1515_s0 + $0x10] sm:$0xff]  ;;  %v28_v4 = vld [vmem:[%s1515_s0 + $0x18] sm:$0xff] }
  0x14   :  { %986 = vmatprep.mubr.msk.f32.mxu0 %vm35_vm0, %v25_v1  ;;  %985 = vmatpush3.msra.mxu0 %v34_v0  ;;  %v29_v5 = vld [vmem:[%s1515_s0 + $0x20] sm:$0xff]  ;;  %v30_v6 = vld [vmem:[%s1515_s0 + $0x28] sm:$0xff]  ;;  %v31_v7 = vld [vmem:[%s1515_s0 + $0x30] sm:$0xff] }
  0x15   :  { %987 = vmatmul.mubr.msk.f32.vlgmr.msra.gmra.mrb[0].mxu0 %vm35_vm0, %v26_v2  ;;  %v32_v8 = vld [vmem:[%s1515_s0 + $0x38] sm:$0xff]  ;;  %v244_v9 = vld [vmem:[#allocation2 + $0x8] sm:$0xff]  ;;  %v245_v10 = vld [vmem:[#allocation2 + $0x10] sm:$0xff] }
  0x16   :  { %989 = vmatprep.mubr.msk.f32.mxu0 %vm35_vm0, %v27_v3  ;;  %v1130_v11 = vpack.c.bf16 %v245_v10, %v244_v9  ;;  %v246_v12 = vld [vmem:[#allocation2 + $0x18] sm:$0xff]  ;;  %v247_v13 = vld [vmem:[#allocation2 + $0x20] sm:$0xff]  ;;  %v248_v15 = vld [vmem:[#allocation2 + $0x28] sm:$0xff] }
  0x17   :  { %v1134_v14 = vpack.c.bf16 %v247_v13, %v246_v12  ;;  %v249_v16 = vld [vmem:[#allocation2 + $0x30] sm:$0xff]  ;;  %v250_v18 = vld [vmem:[#allocation2 + $0x38] sm:$0xff]  ;;  %v251_v19 = vld [vmem:[#allocation2 + $0x40] sm:$0xff] }
  0x18   :  { %1131 = vmatprep.subr.bf16.mxu1 %v1130_v11  ;;  %v1138_v17 = vpack.c.bf16 %v249_v16, %v248_v15  ;;  %v1142_v20 = vpack.c.bf16 %v251_v19, %v250_v18  ;;  %v252_v21 = vld [vmem:[#allocation2 + $0x48] sm:$0xff]  ;;  %v253_v22 = vld [vmem:[#allocation2 + $0x50] sm:$0xff]  ;;  %v254_v24 = vld [vmem:[#allocation2 + $0x58] sm:$0xff] }
  0x19   :  { %990 = vmatmul.mubr.msk.f32.gmra.mrb[2].mxu0 %vm35_vm0, %v28_v4  ;;  %1133 = vmatpush3.bf16.msra.mxu1 %v1130_v11  ;;  %v1146_v23 = vpack.c.bf16 %v253_v22, %v252_v21  ;;  %v255_v25 = vld [vmem:[#allocation2 + $0x60] sm:$0xff]  ;;  %v256_v27 = vld [vmem:[#allocation2 + $0x68] sm:$0xff]  ;;  %v257_v28 = vld [vmem:[#allocation2 + $0x70] sm:$0xff]  ;;  %v212_v22 = vlaneseq }
  0x1a   :  { %992 = vmatprep.mubr.msk.f32.mxu0 %vm35_vm0, %v29_v5  ;;  %1135 = vmatprep.subr.bf16.mxu1 %v1134_v14  ;;  %v1150_v26 = vpack.c.bf16 %v255_v25, %v254_v24  ;;  %v1154_v29 = vpack.c.bf16 %v257_v28, %v256_v27  ;;  %v258_v30 = vld [vmem:[#allocation2 + $0x78] sm:$0xff]  ;;  %v259_v31 = vld [vmem:[#allocation2 + $0x80] sm:$0xff]  ;;  %v1371_v24 = vld [vmem:[#allocation2 + $0x188] sm:$0xff] }
  0x1b   :  { %v1158_v32 = vpack.c.bf16 %v259_v31, %v258_v30 }
  0x1d   :  { %993 = vmatmul.mubr.msk.f32.gmra.mrb[4].mxu0 %vm35_vm0, %v30_v6  ;;  %1137 = vmatpush3.bf16.msra.mxu1 %v1134_v14 }
  0x1e   :  { %995 = vmatprep.mubr.msk.f32.mxu0 %vm35_vm0, %v31_v7  ;;  %1139 = vmatprep.subr.bf16.mxu1 %v1138_v17 }
  0x21   :  { %996 = vmatmul.mubr.msk.f32.gmra.mrb[6].mxu0 %vm35_vm0, %v32_v8  ;;  %1141 = vmatpush3.bf16.msra.mxu1 %v1138_v17 }
  0x22   :  { %1143 = vmatprep.subr.bf16.mxu1 %v1142_v20 }
  0x25   :  { %1145 = vmatpush3.bf16.msra.mxu1 %v1142_v20 }
  0x26   :  { %1147 = vmatprep.subr.bf16.mxu1 %v1146_v23 }
  0x29   :  { %1149 = vmatpush3.bf16.msra.mxu1 %v1146_v23  ;;  %v1369_v23 = vshrl.u32 %v212_v22, 7 }
  0x2a   :  { %1151 = vmatprep.subr.bf16.mxu1 %v1150_v26 }
  0x2b   :  { %v214_v25 = vsub.s32 0, %v1369_v23 }
  0x2d   :  { %1153 = vmatpush3.bf16.msra.mxu1 %v1150_v26  ;;  %v226_v26 = vsub.s32 1, %v1369_v23 }
  0x2e   :  { %1155 = vmatprep.subr.bf16.mxu1 %v1154_v29 }
  0x2f   :  { %v227_v30 = vrot.slane %v1371_v24, %v226_v26 }
  0x31   :  { %1157 = vmatpush3.bf16.msra.mxu1 %v1154_v29 }
  0x32   :  { %1159 = vmatprep.subr.bf16.mxu1 %v1158_v32 }
  0x35   :  { %1161 = vmatpush3.bf16.msra.mxu1 %v1158_v32 }
  0xe8   :  { %v988_v33 = vpop.f32.mrb[0].mxu0 }
  0xe9   :  { %v126_v34 = vpop.f32.mrb[1].mxu0 }
  0xea   :  { %v165_v35 = vadd.f32 %v988_v33, %v126_v34 }
  0xec   :  { %v991_v36 = vpop.f32.mrb[2].mxu0 }
  0xed   :  { %v136_v37 = vpop.f32.mrb[3].mxu0 }
  0xee   :  { %v166_v38 = vadd.f32 %v165_v35, %v136_v37 }
  0xf0   :  { %v994_v39 = vpop.f32.mrb[4].mxu0  ;;  %v167_v40 = vadd.f32 %v991_v36, %v166_v38 }
  0xf1   :  { %v146_v41 = vpop.f32.mrb[5].mxu0 }
  0xf2   :  { %v168_v42 = vadd.f32 %v167_v40, %v146_v41 }
  0xf4   :  { %v997_v43 = vpop.f32.mrb[6].mxu0  ;;  %v169_v44 = vadd.f32 %v994_v39, %v168_v42 }
  0xf5   :  { %v156_v45 = vpop.f32.mrb[7].mxu0 }
  0xf6   :  { %v170_v46 = vadd.f32 %v169_v44, %v156_v45 }
  0xf8   :  { %v171_v47 = vadd.f32 %v997_v43, %v170_v46 }
  0xfa   :  { %v172_v48 = vrot.slane %v171_v47, 4 }
  0xfc   :  { %v173_v49 = vadd.f32 %v172_v48, %v171_v47 }
  0xfe   :  { %v174_v50 = vrot.slane %v173_v49, 2 }
 0x100   :  { %v175_v51 = vadd.f32 %v174_v50, %v173_v49 }
 0x102   :  { %v176_v52 = vrot.slane %v175_v51, 1 }
 0x104   :  { %v177_v53 = vadd.f32 %v176_v52, %v175_v51 }
 0x106   :  { %v178_v54 = vmul.f32 0.015625, %v177_v53 }
 0x108   :  { %v179_v55 = vsub.f32 %v126_v34, %v178_v54  ;;  %v180_v56 = vsub.f32 %v988_v33, %v178_v54  ;;  %v181_v57 = vsub.f32 %v136_v37, %v178_v54  ;;  %v182_v58 = vsub.f32 %v991_v36, %v178_v54 }
 0x109   :  { %v183_v59 = vsub.f32 %v146_v41, %v178_v54  ;;  %v184_v60 = vsub.f32 %v994_v39, %v178_v54  ;;  %v185_v61 = vsub.f32 %v156_v45, %v178_v54  ;;  %v186_v62 = vsub.f32 %v997_v43, %v178_v54 }
 0x10a   :  { %v187_v63 = vmul.f32 %v179_v55, %v179_v55  ;;  %v188_v0 = vmul.f32 %v180_v56, %v180_v56  ;;  %v189_v1 = vmul.f32 %v181_v57, %v181_v57  ;;  %v190_v3 = vmul.f32 %v182_v58, %v182_v58 }
 0x10b   :  { %v191_v5 = vmul.f32 %v183_v59, %v183_v59  ;;  %v192_v7 = vmul.f32 %v184_v60, %v184_v60  ;;  %v193_v9 = vmul.f32 %v185_v61, %v185_v61  ;;  %v194_v11 = vmul.f32 %v186_v62, %v186_v62 }
 0x10c   :  { %v195_v2 = vadd.f32 %v188_v0, %v187_v63  ;;  %v450_v0 = vld [vmem:[#allocation2 + $0xb8] sm:$0xff] }
 0x10e   :  { %v196_v4 = vadd.f32 %v195_v2, %v189_v1  ;;  %v451_v1 = vld [vmem:[#allocation2 + $0xc0] sm:$0xff] }
 0x10f   :  { %v1174_v2 = vpack.c.bf16 %v451_v1, %v450_v0 }
 0x110   :  { %v197_v6 = vadd.f32 %v196_v4, %v190_v3  ;;  %v452_v3 = vld [vmem:[#allocation2 + $0xc8] sm:$0xff]  ;;  %v453_v4 = vld [vmem:[#allocation2 + $0xd0] sm:$0xff] }
 0x112   :  { %v198_v8 = vadd.f32 %v197_v6, %v191_v5  ;;  %v1178_v5 = vpack.c.bf16 %v453_v4, %v452_v3  ;;  %v454_v6 = vld [vmem:[#allocation2 + $0xd8] sm:$0xff] }
 0x114   :  { %v199_v10 = vadd.f32 %v198_v8, %v192_v7  ;;  %v455_v7 = vld [vmem:[#allocation2 + $0xe0] sm:$0xff] }
 0x115   :  { %v1182_v8 = vpack.c.bf16 %v455_v7, %v454_v6  ;;  %v414_v6 = vsub.s32 2, %v1369_v23  ;;  %v426_v7 = vsub.s32 3, %v1369_v23 }
 0x116   :  { %v200_v12 = vadd.f32 %v199_v10, %v193_v9  ;;  %v456_v9 = vld [vmem:[#allocation2 + $0xe8] sm:$0xff]  ;;  %v457_v10 = vld [vmem:[#allocation2 + $0xf0] sm:$0xff] }
 0x118   :  { %v201_v13 = vadd.f32 %v200_v12, %v194_v11  ;;  %v1186_v11 = vpack.c.bf16 %v457_v10, %v456_v9  ;;  %v458_v12 = vld [vmem:[#allocation2 + $0xf8] sm:$0xff] }
 0x11a   :  { %v202_v14 = vrot.slane %v201_v13, 4 }
 0x11c   :  { %v203_v15 = vadd.f32 %v202_v14, %v201_v13  ;;  %v459_v13 = vld [vmem:[#allocation2 + $0x100] sm:$0xff] }
 0x11d   :  { %v1190_v14 = vpack.c.bf16 %v459_v13, %v458_v12 }
 0x11e   :  { %v204_v16 = vrot.slane %v203_v15, 2 }
 0x120   :  { %v205_v17 = vadd.f32 %v204_v16, %v203_v15 }
 0x122   :  { %v206_v18 = vrot.slane %v205_v17, 1 }
 0x124   :  { %v207_v19 = vadd.f32 %v206_v18, %v205_v17 }
 0x126   :  { %v208_v20 = vmul.f32 0.015625, %v207_v19 }
 0x128   :  { %v209_v21 = vadd.f32 1e-05, %v208_v20 }
 0x12a   :  { %1245 = vrsqrt.f32 %v209_v21 }
 0x134   :  { %v1246_v27 = vpop.eup %1245 }
 0x135   :  { %v211_v28 = vmul.f32 %v1246_v27, %v1371_v24 }
 0x137   :  { %v215_v29 = vrot.slane %v211_v28, %v214_v25 }
 0x139   :  { %v222_v31 = vmul.f32 %v215_v29, %v185_v61  ;;  %v216_v32 = vmul.f32 %v215_v29, %v179_v55  ;;  %v217_v33 = vmul.f32 %v215_v29, %v180_v56  ;;  %v218_v34 = vmul.f32 %v215_v29, %v181_v57  ;;  %v444_v55 = vld [vmem:[#allocation2 + $0x88] sm:$0xff]  ;;  %v445_v56 = vld [vmem:[#allocation2 + $0x90] sm:$0xff] }
 0x13a   :  { %v219_v35 = vmul.f32 %v215_v29, %v182_v58  ;;  %v220_v36 = vmul.f32 %v215_v29, %v183_v59  ;;  %v221_v37 = vmul.f32 %v215_v29, %v184_v60  ;;  %v223_v38 = vmul.f32 %v215_v29, %v186_v62  ;;  %v446_v58 = vld [vmem:[#allocation2 + $0x98] sm:$0xff]  ;;  %v447_v59 = vld [vmem:[#allocation2 + $0xa0] sm:$0xff]  ;;  %v448_v61 = vld [vmem:[#allocation2 + $0xa8] sm:$0xff] }
 0x13b   :  { %v228_v39 = vadd.f32 %v227_v30, %v216_v32  ;;  %v229_v40 = vadd.f32 %v227_v30, %v217_v33  ;;  %v230_v41 = vadd.f32 %v227_v30, %v218_v34  ;;  %v234_v50 = vadd.f32 %v227_v30, %v222_v31  ;;  %v449_v62 = vld [vmem:[#allocation2 + $0xb0] sm:$0xff] }
 0x13c   :  { %v231_v44 = vadd.f32 %v227_v30, %v219_v35  ;;  %v232_v46 = vadd.f32 %v227_v30, %v220_v36  ;;  %v233_v48 = vadd.f32 %v227_v30, %v221_v37  ;;  %v235_v52 = vadd.f32 %v227_v30, %v223_v38 }
 0x13d   :  { %v236_v42 = vmax.f32 %v228_v39, 0.0  ;;  %v237_v43 = vmax.f32 %v229_v40, 0.0  ;;  %v238_v45 = vmax.f32 %v230_v41, 0.0  ;;  %v242_v53 = vmax.f32 %v234_v50, 0.0 }
 0x13e   :  { %v239_v47 = vmax.f32 %v231_v44, 0.0  ;;  %v240_v49 = vmax.f32 %v232_v46, 0.0  ;;  %v241_v51 = vmax.f32 %v233_v48, 0.0  ;;  %v243_v54 = vmax.f32 %v235_v52, 0.0 }
 0x13f   :  { %1030 = vmatprep.mubr.f32.mxu1 %v236_v42  ;;  %v1162_v57 = vpack.c.bf16 %v445_v56, %v444_v55  ;;  %v1166_v60 = vpack.c.bf16 %v447_v59, %v446_v58  ;;  %v1170_v63 = vpack.c.bf16 %v449_v62, %v448_v61 }
 0x140   :  { %1031 = vmatmul.mubr.f32.vlgmr.msra.gmra.mrb[0].mxu1 %v237_v43 }
 0x141   :  { %1033 = vmatprep.mubr.f32.mxu1 %v238_v45  ;;  %1163 = vmatprep.subr.bf16.mxu0 %v1162_v57 }
 0x142   :  { %1165 = vmatpush3.bf16.msra.mxu0 %v1162_v57 }
 0x143   :  { %1167 = vmatprep.subr.bf16.mxu0 %v1166_v60 }
 0x144   :  { %1034 = vmatmul.mubr.f32.gmra.mrb[2].mxu1 %v239_v47 }
 0x145   :  { %1036 = vmatprep.mubr.f32.mxu1 %v240_v49 }
 0x146   :  { %1169 = vmatpush3.bf16.msra.mxu0 %v1166_v60 }
 0x147   :  { %1171 = vmatprep.subr.bf16.mxu0 %v1170_v63 }
 0x148   :  { %1037 = vmatmul.mubr.f32.gmra.mrb[4].mxu1 %v241_v51 }
 0x149   :  { %1039 = vmatprep.mubr.f32.mxu1 %v242_v53 }
 0x14a   :  { %1173 = vmatpush3.bf16.msra.mxu0 %v1170_v63 }
 0x14b   :  { %1175 = vmatprep.subr.bf16.mxu0 %v1174_v2 }
 0x14c   :  { %1040 = vmatmul.mubr.f32.gmra.mrb[6].mxu1 %v243_v54 }
 0x14e   :  { %1177 = vmatpush3.bf16.msra.mxu0 %v1174_v2 }
 0x14f   :  { %1179 = vmatprep.subr.bf16.mxu0 %v1178_v5 }
 0x152   :  { %1181 = vmatpush3.bf16.msra.mxu0 %v1178_v5 }
 0x153   :  { %1183 = vmatprep.subr.bf16.mxu0 %v1182_v8 }
 0x156   :  { %1185 = vmatpush3.bf16.msra.mxu0 %v1182_v8 }
 0x157   :  { %1187 = vmatprep.subr.bf16.mxu0 %v1186_v11 }
 0x15a   :  { %1189 = vmatpush3.bf16.msra.mxu0 %v1186_v11  ;;  %v427_v11 = vrot.slane %v1371_v24, %v426_v7 }
 0x15b   :  { %1191 = vmatprep.subr.bf16.mxu0 %v1190_v14 }
 0x15e   :  { %1193 = vmatpush3.bf16.msra.mxu0 %v1190_v14 }
 0x213   :  { %v1032_v15 = vpop.f32.mrb[0].mxu1 }
 0x214   :  { %v326_v16 = vpop.f32.mrb[1].mxu1 }
 0x215   :  { %v365_v17 = vadd.f32 %v1032_v15, %v326_v16 }
 0x217   :  { %v1035_v18 = vpop.f32.mrb[2].mxu1 }
 0x218   :  { %v336_v19 = vpop.f32.mrb[3].mxu1 }
 0x219   :  { %v366_v20 = vadd.f32 %v365_v17, %v336_v19 }
 0x21b   :  { %v1038_v21 = vpop.f32.mrb[4].mxu1  ;;  %v367_v22 = vadd.f32 %v1035_v18, %v366_v20 }
 0x21c   :  { %v346_v25 = vpop.f32.mrb[5].mxu1 }
 0x21d   :  { %v368_v26 = vadd.f32 %v367_v22, %v346_v25 }
 0x21f   :  { %v1041_v27 = vpop.f32.mrb[6].mxu1  ;;  %v369_v28 = vadd.f32 %v1038_v21, %v368_v26 }
 0x220   :  { %v356_v29 = vpop.f32.mrb[7].mxu1 }
 0x221   :  { %v370_v30 = vadd.f32 %v369_v28, %v356_v29 }
 0x223   :  { %v371_v31 = vadd.f32 %v1041_v27, %v370_v30 }
 0x225   :  { %v372_v32 = vrot.slane %v371_v31, 4 }
 0x227   :  { %v373_v33 = vadd.f32 %v372_v32, %v371_v31 }
 0x229   :  { %v374_v34 = vrot.slane %v373_v33, 2 }
 0x22b   :  { %v375_v35 = vadd.f32 %v374_v34, %v373_v33 }
 0x22d   :  { %v376_v36 = vrot.slane %v375_v35, 1 }
 0x22f   :  { %v377_v37 = vadd.f32 %v376_v36, %v375_v35 }
 0x231   :  { %v378_v38 = vmul.f32 0.015625, %v377_v37 }
 0x233   :  { %v379_v39 = vsub.f32 %v326_v16, %v378_v38  ;;  %v380_v40 = vsub.f32 %v1032_v15, %v378_v38  ;;  %v381_v41 = vsub.f32 %v336_v19, %v378_v38  ;;  %v382_v42 = vsub.f32 %v1035_v18, %v378_v38 }
 0x234   :  { %v383_v43 = vsub.f32 %v346_v25, %v378_v38  ;;  %v384_v44 = vsub.f32 %v1038_v21, %v378_v38  ;;  %v385_v45 = vsub.f32 %v356_v29, %v378_v38  ;;  %v386_v46 = vsub.f32 %v1041_v27, %v378_v38  ;;  %v644_v38 = vld [vmem:[#allocation2 + $0x108] sm:$0xff] }
 0x235   :  { %v387_v47 = vmul.f32 %v379_v39, %v379_v39  ;;  %v388_v48 = vmul.f32 %v380_v40, %v380_v40  ;;  %v389_v49 = vmul.f32 %v381_v41, %v381_v41  ;;  %v390_v51 = vmul.f32 %v382_v42, %v382_v42 }
 0x236   :  { %v391_v53 = vmul.f32 %v383_v43, %v383_v43  ;;  %v392_v55 = vmul.f32 %v384_v44, %v384_v44  ;;  %v393_v57 = vmul.f32 %v385_v45, %v385_v45  ;;  %v394_v59 = vmul.f32 %v386_v46, %v386_v46 }
 0x237   :  { %v395_v50 = vadd.f32 %v388_v48, %v387_v47  ;;  %v650_v47 = vld [vmem:[#allocation2 + $0x138] sm:$0xff]  ;;  %v651_v48 = vld [vmem:[#allocation2 + $0x140] sm:$0xff] }
 0x239   :  { %v396_v52 = vadd.f32 %v395_v50, %v389_v49  ;;  %v1206_v49 = vpack.c.bf16 %v651_v48, %v650_v47  ;;  %v652_v50 = vld [vmem:[#allocation2 + $0x148] sm:$0xff] }
 0x23b   :  { %v397_v54 = vadd.f32 %v396_v52, %v390_v51  ;;  %v653_v51 = vld [vmem:[#allocation2 + $0x150] sm:$0xff] }
 0x23c   :  { %v1210_v52 = vpack.c.bf16 %v653_v51, %v652_v50 }
 0x23d   :  { %v398_v56 = vadd.f32 %v397_v54, %v391_v53  ;;  %v654_v53 = vld [vmem:[#allocation2 + $0x158] sm:$0xff]  ;;  %v655_v54 = vld [vmem:[#allocation2 + $0x160] sm:$0xff] }
 0x23f   :  { %v399_v58 = vadd.f32 %v398_v56, %v392_v55  ;;  %v1214_v55 = vpack.c.bf16 %v655_v54, %v654_v53  ;;  %v656_v56 = vld [vmem:[#allocation2 + $0x168] sm:$0xff]  ;;  %v614_v53 = vsub.s32 4, %v1369_v23  ;;  %v626_v54 = vsub.s32 5, %v1369_v23 }
 0x241   :  { %v400_v60 = vadd.f32 %v399_v58, %v393_v57  ;;  %v657_v57 = vld [vmem:[#allocation2 + $0x170] sm:$0xff] }
 0x242   :  { %v1218_v58 = vpack.c.bf16 %v657_v57, %v656_v56 }
 0x243   :  { %v401_v61 = vadd.f32 %v400_v60, %v394_v59  ;;  %v658_v59 = vld [vmem:[#allocation2 + $0x178] sm:$0xff]  ;;  %v659_v60 = vld [vmem:[#allocation2 + $0x180] sm:$0xff] }
 0x245   :  { %v402_v62 = vrot.slane %v401_v61, 4 }
 0x247   :  { %v403_v63 = vadd.f32 %v402_v62, %v401_v61  ;;  %v1222_v61 = vpack.c.bf16 %v659_v60, %v658_v59 }
 0x249   :  { %v404_v0 = vrot.slane %v403_v63, 2 }
 0x24b   :  { %v405_v1 = vadd.f32 %v404_v0, %v403_v63 }
 0x24d   :  { %v406_v2 = vrot.slane %v405_v1, 1 }
 0x24f   :  { %v407_v3 = vadd.f32 %v406_v2, %v405_v1 }
 0x251   :  { %v408_v4 = vmul.f32 0.015625, %v407_v3 }
 0x253   :  { %v409_v5 = vadd.f32 1e-05, %v408_v4 }
 0x255   :  { %1247 = vrsqrt.f32 %v409_v5 }
 0x25f   :  { %v1248_v8 = vpop.eup %1247 }
 0x260   :  { %v411_v9 = vmul.f32 %v1248_v8, %v1371_v24 }
 0x262   :  { %v415_v10 = vrot.slane %v411_v9, %v414_v6 }
 0x264   :  { %v422_v12 = vmul.f32 %v415_v10, %v385_v45  ;;  %v416_v13 = vmul.f32 %v415_v10, %v379_v39  ;;  %v417_v14 = vmul.f32 %v415_v10, %v380_v40  ;;  %v418_v15 = vmul.f32 %v415_v10, %v381_v41  ;;  %v645_v39 = vld [vmem:[#allocation2 + $0x110] sm:$0xff]  ;;  %v646_v41 = vld [vmem:[#allocation2 + $0x118] sm:$0xff] }
 0x265   :  { %v419_v16 = vmul.f32 %v415_v10, %v382_v42  ;;  %v420_v17 = vmul.f32 %v415_v10, %v383_v43  ;;  %v421_v18 = vmul.f32 %v415_v10, %v384_v44  ;;  %v423_v19 = vmul.f32 %v415_v10, %v386_v46  ;;  %v647_v42 = vld [vmem:[#allocation2 + $0x120] sm:$0xff]  ;;  %v648_v44 = vld [vmem:[#allocation2 + $0x128] sm:$0xff]  ;;  %v649_v45 = vld [vmem:[#allocation2 + $0x130] sm:$0xff] }
 0x266   :  { %v428_v20 = vadd.f32 %v427_v11, %v416_v13  ;;  %v429_v21 = vadd.f32 %v427_v11, %v417_v14  ;;  %v430_v22 = vadd.f32 %v427_v11, %v418_v15  ;;  %v434_v33 = vadd.f32 %v427_v11, %v422_v12 }
 0x267   :  { %v431_v27 = vadd.f32 %v427_v11, %v419_v16  ;;  %v432_v29 = vadd.f32 %v427_v11, %v420_v17  ;;  %v433_v31 = vadd.f32 %v427_v11, %v421_v18  ;;  %v435_v35 = vadd.f32 %v427_v11, %v423_v19 }
 0x268   :  { %v436_v25 = vmax.f32 %v428_v20, 0.0  ;;  %v437_v26 = vmax.f32 %v429_v21, 0.0  ;;  %v438_v28 = vmax.f32 %v430_v22, 0.0  ;;  %v442_v36 = vmax.f32 %v434_v33, 0.0 }
 0x269   :  { %v439_v30 = vmax.f32 %v431_v27, 0.0  ;;  %v440_v32 = vmax.f32 %v432_v29, 0.0  ;;  %v441_v34 = vmax.f32 %v433_v31, 0.0  ;;  %v443_v37 = vmax.f32 %v435_v35, 0.0 }
 0x26a   :  { %1074 = vmatprep.mubr.f32.mxu0 %v436_v25  ;;  %v1194_v40 = vpack.c.bf16 %v645_v39, %v644_v38  ;;  %v1198_v43 = vpack.c.bf16 %v647_v42, %v646_v41  ;;  %v1202_v46 = vpack.c.bf16 %v649_v45, %v648_v44 }
 0x26b   :  { %1075 = vmatmul.mubr.f32.vlgmr.msra.gmra.mrb[8].mxu0 %v437_v26 }
 0x26c   :  { %1077 = vmatprep.mubr.f32.mxu0 %v438_v28  ;;  %1195 = vmatprep.subr.bf16.mxu0 %v1194_v40 }
 0x26d   :  { %1226 = vmatprep.subr.bf16.mxu1 %v1194_v40  ;;  %1197 = vmatpush3.bf16.msra.mxu0 %v1194_v40 }
 0x26e   :  { %1234 = vmatpush3.bf16.msra.mxu1 %v1194_v40  ;;  %1199 = vmatprep.subr.bf16.mxu0 %v1198_v43 }
 0x26f   :  { %1078 = vmatmul.mubr.f32.gmra.mrb[10].mxu0 %v439_v30  ;;  %1227 = vmatprep.subr.bf16.mxu1 %v1198_v43 }
 0x270   :  { %1080 = vmatprep.mubr.f32.mxu0 %v440_v32 }
 0x271   :  { %1201 = vmatpush3.bf16.msra.mxu0 %v1198_v43 }
 0x272   :  { %1235 = vmatpush3.bf16.msra.mxu1 %v1198_v43  ;;  %1203 = vmatprep.subr.bf16.mxu0 %v1202_v46 }
 0x273   :  { %1081 = vmatmul.mubr.f32.gmra.mrb[12].mxu0 %v441_v34  ;;  %1228 = vmatprep.subr.bf16.mxu1 %v1202_v46 }
 0x274   :  { %1083 = vmatprep.mubr.f32.mxu0 %v442_v36 }
 0x275   :  { %1205 = vmatpush3.bf16.msra.mxu0 %v1202_v46 }
 0x276   :  { %1236 = vmatpush3.bf16.msra.mxu1 %v1202_v46  ;;  %1207 = vmatprep.subr.bf16.mxu0 %v1206_v49 }
 0x277   :  { %1084 = vmatmul.mubr.f32.gmra.mrb[14].mxu0 %v443_v37  ;;  %1229 = vmatprep.subr.bf16.mxu1 %v1206_v49 }
 0x279   :  { %1209 = vmatpush3.bf16.msra.mxu0 %v1206_v49 }
 0x27a   :  { %1237 = vmatpush3.bf16.msra.mxu1 %v1206_v49  ;;  %1211 = vmatprep.subr.bf16.mxu0 %v1210_v52 }
 0x27b   :  { %1230 = vmatprep.subr.bf16.mxu1 %v1210_v52 }
 0x27d   :  { %1213 = vmatpush3.bf16.msra.mxu0 %v1210_v52 }
 0x27e   :  { %1238 = vmatpush3.bf16.msra.mxu1 %v1210_v52  ;;  %1215 = vmatprep.subr.bf16.mxu0 %v1214_v55 }
 0x27f   :  { %1231 = vmatprep.subr.bf16.mxu1 %v1214_v55 }
 0x281   :  { %1217 = vmatpush3.bf16.msra.mxu0 %v1214_v55 }
 0x282   :  { %1239 = vmatpush3.bf16.msra.mxu1 %v1214_v55  ;;  %1219 = vmatprep.subr.bf16.mxu0 %v1218_v58 }
 0x283   :  { %1232 = vmatprep.subr.bf16.mxu1 %v1218_v58 }
 0x285   :  { %1221 = vmatpush3.bf16.msra.mxu0 %v1218_v58 }
 0x286   :  { %1240 = vmatpush3.bf16.msra.mxu1 %v1218_v58  ;;  %1223 = vmatprep.subr.bf16.mxu0 %v1222_v61  ;;  %v627_v58 = vrot.slane %v1371_v24, %v626_v54 }
 0x287   :  { %1233 = vmatprep.subr.bf16.mxu1 %v1222_v61 }
 0x289   :  { %1225 = vmatpush3.bf16.msra.mxu0 %v1222_v61 }
 0x28a   :  { %1241 = vmatpush3.bf16.msra.mxu1 %v1222_v61 }
 0x33e   :  { %v1076_v62 = vpop.f32.mrb[8].mxu0 }
 0x33f   :  { %v526_v63 = vpop.f32.mrb[9].mxu0 }
 0x340   :  { %v565_v0 = vadd.f32 %v1076_v62, %v526_v63 }
 0x342   :  { %v1079_v1 = vpop.f32.mrb[10].mxu0 }
 0x343   :  { %v536_v2 = vpop.f32.mrb[11].mxu0 }
 0x344   :  { %v566_v3 = vadd.f32 %v565_v0, %v536_v2 }
 0x346   :  { %v1082_v4 = vpop.f32.mrb[12].mxu0  ;;  %v567_v5 = vadd.f32 %v1079_v1, %v566_v3 }
 0x347   :  { %v546_v6 = vpop.f32.mrb[13].mxu0 }
 0x348   :  { %v568_v7 = vadd.f32 %v567_v5, %v546_v6 }
 0x34a   :  { %v1085_v8 = vpop.f32.mrb[14].mxu0  ;;  %v569_v9 = vadd.f32 %v1082_v4, %v568_v7 }
 0x34b   :  { %v556_v10 = vpop.f32.mrb[15].mxu0 }
 0x34c   :  { %v570_v11 = vadd.f32 %v569_v9, %v556_v10 }
 0x34e   :  { %v571_v12 = vadd.f32 %v1085_v8, %v570_v11 }
 0x350   :  { %v572_v13 = vrot.slane %v571_v12, 4 }
 0x352   :  { %v573_v14 = vadd.f32 %v572_v13, %v571_v12 }
 0x354   :  { %v574_v15 = vrot.slane %v573_v14, 2 }
 0x356   :  { %v575_v16 = vadd.f32 %v574_v15, %v573_v14 }
 0x358   :  { %v576_v17 = vrot.slane %v575_v16, 1 }
 0x35a   :  { %v577_v18 = vadd.f32 %v576_v17, %v575_v16 }
 0x35c   :  { %v578_v19 = vmul.f32 0.015625, %v577_v18 }
 0x35e   :  { %v579_v20 = vsub.f32 %v526_v63, %v578_v19  ;;  %v580_v21 = vsub.f32 %v1076_v62, %v578_v19  ;;  %v581_v22 = vsub.f32 %v536_v2, %v578_v19  ;;  %v582_v25 = vsub.f32 %v1079_v1, %v578_v19 }
 0x35f   :  { %v583_v26 = vsub.f32 %v546_v6, %v578_v19  ;;  %v584_v27 = vsub.f32 %v1082_v4, %v578_v19  ;;  %v585_v28 = vsub.f32 %v556_v10, %v578_v19  ;;  %v586_v29 = vsub.f32 %v1085_v8, %v578_v19 }
 0x360   :  { %v587_v30 = vmul.f32 %v579_v20, %v579_v20  ;;  %v588_v31 = vmul.f32 %v580_v21, %v580_v21  ;;  %v589_v32 = vmul.f32 %v581_v22, %v581_v22  ;;  %v590_v34 = vmul.f32 %v582_v25, %v582_v25 }
 0x361   :  { %v591_v36 = vmul.f32 %v583_v26, %v583_v26  ;;  %v592_v38 = vmul.f32 %v584_v27, %v584_v27  ;;  %v593_v40 = vmul.f32 %v585_v28, %v585_v28  ;;  %v594_v42 = vmul.f32 %v586_v29, %v586_v29 }
 0x362   :  { %v595_v33 = vadd.f32 %v588_v31, %v587_v30  ;;  %v662_v19 = vsub.s32 6, %v1369_v23 }
 0x364   :  { %v596_v35 = vadd.f32 %v595_v33, %v589_v32 }
 0x366   :  { %v597_v37 = vadd.f32 %v596_v35, %v590_v34 }
 0x368   :  { %v598_v39 = vadd.f32 %v597_v37, %v591_v36 }
 0x36a   :  { %v599_v41 = vadd.f32 %v598_v39, %v592_v38 }
 0x36c   :  { %v600_v43 = vadd.f32 %v599_v41, %v593_v40 }
 0x36e   :  { %v601_v44 = vadd.f32 %v600_v43, %v594_v42 }
 0x370   :  { %v602_v45 = vrot.slane %v601_v44, 4 }
 0x372   :  { %v603_v46 = vadd.f32 %v602_v45, %v601_v44 }
 0x374   :  { %v604_v47 = vrot.slane %v603_v46, 2 }
 0x376   :  { %v605_v48 = vadd.f32 %v604_v47, %v603_v46 }
 0x378   :  { %v606_v49 = vrot.slane %v605_v48, 1 }
 0x37a   :  { %v607_v50 = vadd.f32 %v606_v49, %v605_v48 }
 0x37c   :  { %v608_v51 = vmul.f32 0.015625, %v607_v50 }
 0x37e   :  { %v609_v52 = vadd.f32 1e-05, %v608_v51 }
 0x380   :  { %1249 = vrsqrt.f32 %v609_v52 }
 0x38a   :  { %v1250_v55 = vpop.eup %1249 }
 0x38b   :  { %v611_v56 = vmul.f32 %v1250_v55, %v1371_v24 }
 0x38d   :  { %v615_v57 = vrot.slane %v611_v56, %v614_v53 }
 0x38f   :  { %v622_v59 = vmul.f32 %v615_v57, %v585_v28  ;;  %v616_v60 = vmul.f32 %v615_v57, %v579_v20  ;;  %v618_v61 = vmul.f32 %v615_v57, %v581_v22  ;;  %v617_v62 = vmul.f32 %v615_v57, %v580_v21 }
 0x390   :  { %v619_v63 = vmul.f32 %v615_v57, %v582_v25  ;;  %v620_v0 = vmul.f32 %v615_v57, %v583_v26  ;;  %v621_v1 = vmul.f32 %v615_v57, %v584_v27  ;;  %v623_v2 = vmul.f32 %v615_v57, %v586_v29 }
 0x391   :  { %v628_v3 = vadd.f32 %v627_v58, %v616_v60  ;;  %v630_v4 = vadd.f32 %v627_v58, %v618_v61  ;;  %v629_v5 = vadd.f32 %v627_v58, %v617_v62  ;;  %v634_v14 = vadd.f32 %v627_v58, %v622_v59 }
 0x392   :  { %v631_v6 = vadd.f32 %v627_v58, %v619_v63  ;;  %v632_v7 = vadd.f32 %v627_v58, %v620_v0  ;;  %v633_v12 = vadd.f32 %v627_v58, %v621_v1  ;;  %v635_v16 = vadd.f32 %v627_v58, %v623_v2 }
 0x393   :  { %v636_v8 = vmax.f32 %v628_v3, 0.0  ;;  %v638_v9 = vmax.f32 %v630_v4, 0.0  ;;  %v637_v10 = vmax.f32 %v629_v5, 0.0  ;;  %v642_v17 = vmax.f32 %v634_v14, 0.0 }
 0x394   :  { %v639_v11 = vmax.f32 %v631_v6, 0.0  ;;  %v640_v13 = vmax.f32 %v632_v7, 0.0  ;;  %v641_v15 = vmax.f32 %v633_v12, 0.0  ;;  %v643_v18 = vmax.f32 %v635_v16, 0.0 }
 0x395   :  { %1118 = vmatprep.mubr.f32.mxu0 %v636_v8  ;;  %1121 = vmatprep.mubr.f32.mxu1 %v638_v9  ;;  %v663_v20 = vrot.slane %v1371_v24, %v662_v19 }
 0x396   :  { %1119 = vmatmul.mubr.f32.vlgmr.msra.gmra.mrb[16].mxu0 %v637_v10  ;;  %1122 = vmatmul.mubr.f32.vlgmr.msra.gmra.mrb[8].mxu1 %v639_v11 }
 0x397   :  { %1124 = vmatprep.mubr.f32.mxu1 %v640_v13 }
 0x39a   :  { %1125 = vmatmul.mubr.f32.gmra.mrb[10].mxu1 %v641_v15 }
 0x39b   :  { %1127 = vmatprep.mubr.f32.mxu1 %v642_v17 }
 0x39e   :  { %1128 = vmatmul.mubr.f32.gmra.mrb[12].mxu1 %v643_v18 }
 0x469   :  { %v1120_v21 = vpop.f32.mrb[16].mxu0  ;;  %v1123_v22 = vpop.f32.mrb[8].mxu1 }
 0x46a   :  { %v1387_v25 = vadd.f32 %v1120_v21, %v663_v20  ;;  %v1389_v26 = vadd.f32 %v1123_v22, %v663_v20  ;;  %v730_v27 = vpop.f32.mrb[17].mxu0  ;;  %v740_v28 = vpop.f32.mrb[9].mxu1 }
 0x46b   :  { %v1391_v29 = vadd.f32 %v730_v27, %v663_v20  ;;  %v1393_v30 = vadd.f32 %v740_v28, %v663_v20 }
 0x46c   :  { %v770_v31 = vmin.f32 %v1387_v25, 20.0  ;;  %v772_v32 = vmin.f32 %v1389_v26, 20.0  ;;  %vm866_vm1 = vcmp.gt.f32.partialorder %v1387_v25, 20.0  ;;  %vm868_vm3 = vcmp.gt.f32.partialorder %v1389_v26, 20.0 }
 0x46d   :  { %v769_v23 = vmin.f32 %v1391_v29, 20.0  ;;  %v771_v24 = vmin.f32 %v1393_v30, 20.0  ;;  %v1126_v33 = vpop.f32.mrb[10].mxu1  ;;  %vm865_vm4 = vcmp.gt.f32.partialorder %v1391_v29, 20.0  ;;  %vm867_vm6 = vcmp.gt.f32.partialorder %v1393_v30, 20.0 }
 0x46e   :  { %v779_v34 = vmul.f32 1.442695, %v770_v31  ;;  %v783_v35 = vmul.f32 1.442695, %v772_v32  ;;  %v1399_v36 = vadd.f32 %v1126_v33, %v663_v20  ;;  %v750_v37 = vpop.f32.mrb[11].mxu1 }
 0x46f   :  { %v777_v38 = vmul.f32 1.442695, %v769_v23  ;;  %v781_v39 = vmul.f32 1.442695, %v771_v24  ;;  %v1401_v40 = vadd.f32 %v750_v37, %v663_v20 }
 0x470   :  { %1251 = vpow2.f32 %v779_v34  ;;  %v774_v41 = vmin.f32 %v1399_v36, 20.0  ;;  %vm870_vm11 = vcmp.gt.f32.partialorder %v1399_v36, 20.0 }
 0x471   :  { %1253 = vpow2.f32 %v783_v35  ;;  %v773_v42 = vmin.f32 %v1401_v40, 20.0  ;;  %v1129_v43 = vpop.f32.mrb[12].mxu1  ;;  %vm869_vm13 = vcmp.gt.f32.partialorder %v1401_v40, 20.0 }
 0x472   :  { %1255 = vpow2.f32 %v777_v38  ;;  %v787_v44 = vmul.f32 1.442695, %v774_v41  ;;  %v1405_v45 = vadd.f32 %v1129_v43, %v663_v20  ;;  %v760_v46 = vpop.f32.mrb[13].mxu1 }
 0x473   :  { %1257 = vpow2.f32 %v781_v39  ;;  %v785_v47 = vmul.f32 1.442695, %v773_v42  ;;  %v1407_v48 = vadd.f32 %v760_v46, %v663_v20 }
 0x474   :  { %1259 = vpow2.f32 %v787_v44  ;;  %v776_v49 = vmin.f32 %v1405_v45, 20.0  ;;  %vm872_vm15 = vcmp.gt.f32.partialorder %v1405_v45, 20.0 }
 0x475   :  { %v775_v50 = vmin.f32 %v1407_v48, 20.0  ;;  %1261 = vpow2.f32 %v785_v47 }
 0x476   :  { %v791_v51 = vmul.f32 1.442695, %v776_v49 }
 0x477   :  { %v789_v52 = vmul.f32 1.442695, %v775_v50 }
 0x478   :  { %1263 = vpow2.f32 %v791_v51 }
 0x479   :  { %1265 = vpow2.f32 %v789_v52 }
 0x47a   :  { %v1252_v53 = vpop.eup %1251 }
 0x47b   :  { %v1254_v54 = vpop.eup %1253  ;;  %v802_v55 = vadd.f32 1.0, %v1252_v53  ;;  %v805_v61 = vmul.f32 -0.5, %v1252_v53  ;;  %v808_v5 = vand.u32 2147483647, %v1252_v53 }
 0x47c   :  { %v1256_v56 = vpop.eup %1255  ;;  %v820_v57 = vadd.f32 1.0, %v1254_v54  ;;  %v823_v62 = vmul.f32 -0.5, %v1254_v54  ;;  %v826_v6 = vand.u32 2147483647, %v1254_v54 }
 0x47d   :  { %v1411_v58 = vpop.eup %1257  ;;  %1267 = vlog2.f32 %v802_v55  ;;  %v793_v59 = vadd.f32 1.0, %v1256_v56  ;;  %v796_v1 = vmul.f32 -0.5, %v1256_v56  ;;  %v806_v4 = vadd.f32 1.0, %v805_v61 }
 0x47e   :  { %v1413_v60 = vpop.eup %1259  ;;  %1269 = vlog2.f32 %v820_v57  ;;  %v811_v63 = vadd.f32 1.0, %v1411_v58  ;;  %v824_v8 = vadd.f32 1.0, %v823_v62  ;;  %v814_v9 = vmul.f32 -0.5, %v1411_v58 }
 0x47f   :  { %1271 = vlog2.f32 %v793_v59  ;;  %v1416_v0 = vpop.eup %1261  ;;  %v838_v2 = vadd.f32 1.0, %v1413_v60  ;;  %v797_v12 = vadd.f32 1.0, %v796_v1  ;;  %v799_v13 = vand.u32 2147483647, %v1256_v56 }
 0x480   :  { %1273 = vlog2.f32 %v811_v63  ;;  %v829_v10 = vadd.f32 1.0, %v1416_v0  ;;  %vm1429_vm5 = vcmp.lt.f32.partialorder %v808_v5, 0.0004427343  ;;  %v841_v15 = vmul.f32 -0.5, %v1413_v60 }
 0x481   :  { %1275 = vlog2.f32 %v838_v2  ;;  %v807_v18 = vmul.f32 %v1252_v53, %v806_v4  ;;  %v825_v19 = vmul.f32 %v1254_v54, %v824_v8  ;;  %vm1436_vm7 = vcmp.lt.f32.partialorder %v826_v6, 0.0004427343 }
 0x482   :  { %v1419_v3 = vpop.eup %1263  ;;  %1277 = vlog2.f32 %v829_v10  ;;  %v815_v21 = vadd.f32 1.0, %v814_v9  ;;  %v817_v28 = vand.u32 2147483647, %v1411_v58  ;;  %v832_v31 = vmul.f32 -0.5, %v1416_v0 }
 0x483   :  { %v1421_v7 = vpop.eup %1265  ;;  %v856_v11 = vadd.f32 1.0, %v1419_v3  ;;  %v798_v24 = vmul.f32 %v1256_v56, %v797_v12  ;;  %vm1442_vm8 = vcmp.lt.f32.partialorder %v799_v13, 0.0004427343  ;;  %v859_v34 = vmul.f32 -0.5, %v1419_v3 }
 0x484   :  { %v847_v16 = vadd.f32 1.0, %v1421_v7  ;;  %v842_v38 = vadd.f32 1.0, %v841_v15  ;;  %v844_v39 = vand.u32 2147483647, %v1413_v60  ;;  %v816_v44 = vmul.f32 %v1411_v58, %v815_v21 }
 0x485   :  { %1279 = vlog2.f32 %v856_v11  ;;  %v850_v46 = vmul.f32 -0.5, %v1421_v7  ;;  %v833_v50 = vadd.f32 1.0, %v832_v31  ;;  %vm818_vm9 = vcmp.lt.f32.partialorder %v817_v28, 0.0004427343 }
 0x486   :  { %1281 = vlog2.f32 %v847_v16  ;;  %v835_v53 = vand.u32 2147483647, %v1416_v0  ;;  %v860_v54 = vadd.f32 1.0, %v859_v34  ;;  %v843_v56 = vmul.f32 %v1413_v60, %v842_v38 }
 0x487   :  { %v1268_v17 = vpop.eup %1267  ;;  %v862_v57 = vand.u32 2147483647, %v1419_v3  ;;  %vm845_vm10 = vcmp.lt.f32.partialorder %v844_v39, 0.0004427343  ;;  %v851_v59 = vadd.f32 1.0, %v850_v46  ;;  %v834_v60 = vmul.f32 %v1416_v0, %v833_v50 }
 0x488   :  { %v1270_v22 = vpop.eup %1269  ;;  %v804_v27 = vmul.f32 0.6931472, %v1268_v17  ;;  %v853_v1 = vand.u32 2147483647, %v1421_v7  ;;  %vm836_vm12 = vcmp.lt.f32.partialorder %v835_v53, 0.0004427343  ;;  %v861_v4 = vmul.f32 %v1419_v3, %v860_v54 }
 0x489   :  { %v1272_v32 = vpop.eup %1271  ;;  %v822_v23 = vmul.f32 0.6931472, %v1270_v22  ;;  %vm863_vm14 = vcmp.lt.f32.partialorder %v862_v57, 0.0004427343  ;;  %v852_v9 = vmul.f32 %v1421_v7, %v851_v59 }
 0x48a   :  { %v810_v35 = vsel %vm1429_vm5, %v807_v18, %v804_v27  ;;  %v795_v37 = vmul.f32 0.6931472, %v1272_v32  ;;  %v1274_v41 = vpop.eup %1273  ;;  %vm854_vm0 = vcmp.lt.f32.partialorder %v853_v1, 0.0004427343 }
 0x48b   :  { %v874_v42 = vsel %vm866_vm1, %v1387_v25, %v810_v35  ;;  %v828_v43 = vsel %vm1436_vm7, %v825_v19, %v822_v23  ;;  %v813_v25 = vmul.f32 0.6931472, %v1274_v41  ;;  %v1276_v51 = vpop.eup %1275  ;;  %vm871_vm1 = vcmp.gt.f32.partialorder %v1407_v48, 20.0 }
 0x48c   :  { %883 = vst.msk [vmem:[%s1517_s2 + $0x8] sm:$0xff] %vm881_vm2, %v874_v42  ;;  %v876_v47 = vsel %vm868_vm3, %v1389_v26, %v828_v43  ;;  %v801_v49 = vsel %vm1442_vm8, %v798_v24, %v795_v37  ;;  %v840_v55 = vmul.f32 0.6931472, %v1276_v51  ;;  %v1278_v58 = vpop.eup %1277 }
 0x48d   :  { %885 = vst.msk [vmem:[%s1517_s2 + $0x18] sm:$0xff] %vm881_vm2, %v876_v47  ;;  %v873_v52 = vsel %vm865_vm4, %v1391_v29, %v801_v49  ;;  %v819_v26 = vsel %vm818_vm9, %v816_v44, %v813_v25  ;;  %v831_v63 = vmul.f32 0.6931472, %v1278_v58 }
 0x48e   :  { %882 = vst.msk [vmem:[%s1517_s2] sm:$0xff] %vm881_vm2, %v873_v52  ;;  %v875_v29 = vsel %vm867_vm6, %v1393_v30, %v819_v26  ;;  %v846_v62 = vsel %vm845_vm10, %v843_v56, %v840_v55 }
 0x48f   :  { %v1280_v61 = vpop.eup %1279  ;;  %884 = vst.msk [vmem:[%s1517_s2 + $0x10] sm:$0xff] %vm881_vm2, %v875_v29  ;;  %v878_v2 = vsel %vm870_vm11, %v1399_v36, %v846_v62  ;;  %v837_v6 = vsel %vm836_vm12, %v834_v60, %v831_v63 }
 0x490   :  { %v858_v30 = vmul.f32 0.6931472, %v1280_v61  ;;  %v1282_v5 = vpop.eup %1281  ;;  %887 = vst.msk [vmem:[%s1517_s2 + $0x28] sm:$0xff] %vm881_vm2, %v878_v2  ;;  %v877_v0 = vsel %vm869_vm13, %v1401_v40, %v837_v6 }
 0x491   :  { %v849_v36 = vmul.f32 0.6931472, %v1282_v5  ;;  %886 = vst.msk [vmem:[%s1517_s2 + $0x20] sm:$0xff] %vm881_vm2, %v877_v0 }
 0x492   :  { %v864_v8 = vsel %vm863_vm14, %v861_v4, %v858_v30 }
 0x493   :  { %v880_v3 = vsel %vm872_vm15, %v1405_v45, %v864_v8  ;;  %v855_v10 = vsel %vm854_vm0, %v852_v9, %v849_v36 }
 0x494   :  { %889 = vst.msk [vmem:[%s1517_s2 + $0x38] sm:$0xff] %vm881_vm2, %v880_v3  ;;  %v879_v40 = vsel %vm871_vm1, %v1407_v48, %v855_v10 }
 0x495   :  { %888 = vst.msk [vmem:[%s1517_s2 + $0x30] sm:$0xff] %vm881_vm2, %v879_v40 }
 0x496   :  { %894 = vsyncpa [#allocation3], 1 }

</bundles_post_ra>
